<compile_context>
chip_gen: v5e
topology: v5e:2x2
jax: 0.10.0
libtpu: 0.0.40
codegen_flags: <defaults>
</compile_context>

<pallas_src>
import functools

import jax
import jax.numpy as jnp
from jax.experimental import pallas as pl
from jax.experimental.pallas import tpu as pltpu


def _duel_kernel(x_ref, w1_ref, b1_ref, w2_ref, b2_ref, out_ref, *,
                 output_size, zpad, actions_per_chunk):
    x = x_ref[...]                                                     # (TB, D)

    # Fused first layer (adv + vf branches) -> ReLU.  One MXU call, f32 acc.
    h = jnp.dot(x, w1_ref[...], preferred_element_type=jnp.float32) + b1_ref[...]
    h = jnp.maximum(h, 0.0)                                            # (TB, 2H)

    # Second matmul + softmax in 256-column (2-action) chunks: each chunk is one
    # MXU call; its action blocks are softmaxed and stored straight away, so the
    # full (TB, A*Zp) q tensor is never materialized in VMEM.
    for a0 in range(0, output_size, actions_per_chunk):
        na = min(actions_per_chunk, output_size - a0)
        lo = a0 * zpad
        width = na * zpad
        qc = jnp.dot(h, w2_ref[:, lo:lo + width],
                     preferred_element_type=jnp.float32) + b2_ref[:, lo:lo + width]

        # Per-action softmax over 128-aligned atom blocks (unmasked full stores).
        for j in range(na):
            s0 = j * zpad
            qa = qc[:, s0:s0 + zpad]
            qa = qa - jnp.max(qa, axis=-1, keepdims=True)
            e = jnp.exp(qa)
            s = jnp.sum(e, axis=-1, keepdims=True)
            r = pl.reciprocal(s, approx=True)        # EUP vrcp (free slot)
            r = r * (2.0 - s * r)                    # one Newton step -> near-exact
            out_ref[:, lo + s0:lo + s0 + zpad] = (e * r).astype(out_ref.dtype)


def _fuse_params(params, *, output_size, atoms):
    """Fold both branches + adv-mean subtraction into two fused weight matrices."""
    w1a, b1a, w2a, b2a, w1v, b1v, w2v, b2v = params
    D, H = w1a.shape
    A, Z = output_size, atoms
    Zp = ((Z + 127) // 128) * 128                # lane-aligned atom width

    # Fused first layer: one (D, 2H) matmul instead of two (D, H) ones.
    w1 = jnp.concatenate([w1a, w1v], axis=1)                      # (D, 2H)
    b1 = jnp.concatenate([b1a, b1v], axis=1)                      # (1, 2H)

    # Fold q = v + adv - adv_mean into one (2H, A*Zp) matmul.
    w2a_r = w2a.reshape(H, A, Z)
    b2a_r = b2a.reshape(1, A, Z)
    top = w2a_r - jnp.mean(w2a_r, axis=1, keepdims=True)          # adv_a - adv_mean
    bot = jnp.broadcast_to(w2v[:, None, :], (H, A, Z))            # + v
    bq = b2a_r - jnp.mean(b2a_r, axis=1, keepdims=True) + b2v[:, None, :]

    # Lane-align atoms: weight 0 / bias -1e30 so padded atoms get probability 0.
    pad = Zp - Z
    top = jnp.pad(top, ((0, 0), (0, 0), (0, pad)))
    bot = jnp.pad(bot, ((0, 0), (0, 0), (0, pad)))
    bq = jnp.pad(bq, ((0, 0), (0, 0), (0, pad)), constant_values=-1e30)

    w2 = jnp.concatenate([top, bot], axis=0).reshape(2 * H, A * Zp)   # (2H, A*Zp)
    b2 = bq.reshape(1, A * Zp)                                        # (1, A*Zp)
    return w1, b1, w2, b2, Zp


def _round_up(v, m):
    return ((v + m - 1) // m) * m


def _vmem_estimate(block_b, D, H2, Np, chunk_cols, out_bytes):
    """Conservative per-step VMEM estimate (double-buffered tiles + weights + temps)."""
    f32 = 4
    x_tiles = 2 * block_b * D * f32                       # double-buffered input tile
    out_tiles = 2 * block_b * Np * out_bytes              # double-buffered output tile
    weights = 2 * (D * H2 + H2 + H2 * Np + Np) * f32      # constant-index, worst case 2x
    temps = block_b * (H2 + 4 * chunk_cols) * f32         # h + per-chunk q/exp temps
    return x_tiles + out_tiles + weights + temps


def _select_block_b(B, D, H2, Np, chunk_cols, out_bytes):
    if B <= 256:
        blk = B                               # single tile; grid = (1,)
    else:
        # >=2 grid steps so the ("parallel",) batch axis splits across both
        # TensorCores on v7x; tiles up to 2048 rows amortize per-step overhead.
        blk = min(2048, _round_up(pl.cdiv(B, 2), 8))
        blk = min(blk, _round_up(B, 8))
    # Keep total VMEM under ~40 MiB so it also fits v7x's 64 MiB physical VMEM.
    while blk > 8 and _vmem_estimate(blk, D, H2, Np, chunk_cols, out_bytes) > (40 << 20):
        blk = max(8, _round_up(blk // 2, 8))
    return blk


def categorical_duel_forward(x, params, *, output_size, atoms, block_b=None,
                             unpad=False, out_dtype=jnp.float32):
    """x: (B, input_size) float32.

    Returns the per-action softmax distribution.
      unpad=False (default, fast): (B, output_size, Zp) with Zp=128-aligned atoms;
        entries [..., atoms:] are exactly 0, so slicing/summing over the real atoms
        is unchanged and no extra HBM pass is spent un-padding.
      unpad=True: (B, output_size, atoms), materializing the slice (extra HBM pass).
    out_dtype=jnp.bfloat16 halves the output writeback (skip if 1e-4 atol needed).
    """
    B, D = x.shape
    w1, b1, w2, b2, zpad = _fuse_params(params, output_size=output_size, atoms=atoms)
    H2 = w1.shape[1]                  # 2 * hidden_size
    A = output_size
    Np = A * zpad
    out_bytes = jnp.dtype(out_dtype).itemsize

    # 2 actions per 256-column chunk (matches the 256-wide MXU on v6e/v7x).
    actions_per_chunk = max(1, 256 // zpad)
    chunk_cols = actions_per_chunk * zpad

    if block_b is None:
        block_b = _select_block_b(B, D, H2, Np, chunk_cols, out_bytes)
    grid = (pl.cdiv(B, block_b),)

    est = _vmem_estimate(block_b, D, H2, Np, chunk_cols, out_bytes)
    vmem_limit = int(min(48 << 20, max(est + (8 << 20), 32 << 20)))

    kern = functools.partial(_duel_kernel, output_size=A, zpad=zpad,
                             actions_per_chunk=actions_per_chunk)

    flops = 2 * B * (D * H2 + H2 * Np)
    transcendentals = B * Np + B * A                    # exp + reciprocal
    bytes_accessed = (4 * (B * D + D * H2 + H2 + H2 * Np + Np)
                      + out_bytes * B * Np)

    flat = pl.pallas_call(
        kern,
        out_shape=jax.ShapeDtypeStruct((B, Np), out_dtype),
        grid=grid,
        in_specs=[
            pl.BlockSpec((block_b, D), lambda i: (i, 0)),   # x: batch-tiled
            pl.BlockSpec((D, H2), lambda i: (0, 0)),        # weights: VMEM-resident
            pl.BlockSpec((1, H2), lambda i: (0, 0)),
            pl.BlockSpec((H2, Np), lambda i: (0, 0)),
            pl.BlockSpec((1, Np), lambda i: (0, 0)),
        ],
        out_specs=pl.BlockSpec((block_b, Np), lambda i: (i, 0)),
        compiler_params=pltpu.CompilerParams(
            dimension_semantics=("parallel",),              # shard batch across TCs
            vmem_limit_bytes=vmem_limit),
        cost_estimate=pl.CostEstimate(
            flops=flops, transcendentals=transcendentals,
            bytes_accessed=bytes_accessed),
    )(x, w1, b1, w2, b2)

    # Contiguous reshape only (no data movement): (B, A*Zp) -> (B, A, Zp).
    dist = flat.reshape(B, A, zpad)
    if unpad:
        dist = dist[..., :atoms]       # extra HBM pass; only when the API needs it
    return dist


def init_params(key, input_size, hidden_size, output_size, atoms):
    """PyTorch-Linear-style init: U(-1/sqrt(fan_in), 1/sqrt(fan_in)); W stored (in,out)."""
    def linear(key, fan_in, fan_out):
        kw, kb = jax.random.split(key)
        bound = 1.0 / jnp.sqrt(jnp.float32(fan_in))
        w = jax.random.uniform(kw, (fan_in, fan_out), jnp.float32, -bound, bound)
        b = jax.random.uniform(kb, (1, fan_out), jnp.float32, -bound, bound)
        return w, b

    k1, k2, k3, k4 = jax.random.split(key, 4)
    w1a, b1a = linear(k1, input_size, hidden_size)
    w2a, b2a = linear(k2, hidden_size, output_size * atoms)
    w1v, b1v = linear(k3, input_size, hidden_size)
    w2v, b2v = linear(k4, hidden_size, atoms)
    return (w1a, b1a, w2a, b2a, w1v, b1v, w2v, b2v)


def reference_forward(x, params, *, output_size, atoms):
    """Pure-JAX reference mirroring the PyTorch module (softmax path)."""
    w1a, b1a, w2a, b2a, w1v, b1v, w2v, b2v = params
    adv = jnp.maximum(x @ w1a + b1a, 0.0) @ w2a + b2a
    v = jnp.maximum(x @ w1v + b1v, 0.0) @ w2v + b2v
    adv = adv.reshape(-1, output_size, atoms)
    v = v.reshape(-1, 1, atoms)
    q = v + adv - adv.mean(axis=1, keepdims=True)
    return jax.nn.softmax(q, axis=-1)


if __name__ == "__main__":
    batch = 2
    input_size = 32
    hidden_size = 32
    output_size = 4
    atoms = 51

    key = jax.random.PRNGKey(0)
    kx, kp = jax.random.split(key)
    x = jax.random.normal(kx, (batch, input_size), jnp.float32)
    params = init_params(kp, input_size, hidden_size, output_size, atoms)

    # Fast path: padded distribution straight from the kernel (no un-pad pass).
    out_padded = categorical_duel_forward(x, params, output_size=output_size, atoms=atoms)
    out_padded = jax.block_until_ready(out_padded)

    ref = reference_forward(x, params, output_size=output_size, atoms=atoms)

    assert out_padded.shape[0] == batch and out_padded.shape[1] == output_size
    assert out_padded.shape[2] >= atoms and out_padded.shape[2] % 128 == 0
    # Padded atoms carry exactly zero probability.
    assert jnp.allclose(out_padded[..., atoms:], 0.0)
    # Real atoms match the reference (strict API shape obtained by consumer-side slice).
    out = out_padded[..., :atoms]
    assert out.shape == (batch, output_size, atoms)
    assert jnp.allclose(out, ref, atol=1e-4, rtol=1e-4)
    assert jnp.allclose(out.sum(-1), 1.0, atol=1e-4)
    assert jnp.allclose(out_padded.sum(-1), 1.0, atol=1e-4)

    print("KERNEL_OK")
</pallas_src>

<mosaic_0001>
module attributes {stable_mosaic.version = 11 : i64} {
  func.func @_duel_kernel(%arg0: i32, %arg1: memref<2x32xf32, #tpu.memory_space<vmem>>, %arg2: memref<32x64xf32, #tpu.memory_space<vmem>>, %arg3: memref<1x64xf32, #tpu.memory_space<vmem>>, %arg4: memref<64x512xf32, #tpu.memory_space<vmem>>, %arg5: memref<1x512xf32, #tpu.memory_space<vmem>>, %arg6: memref<2x512xf32, #tpu.memory_space<vmem>>) attributes {dimension_semantics = [#tpu.dimension_semantics<parallel>], iteration_bounds = array<i64: 1>, scalar_prefetch = 0 : i64, scratch_operands = 0 : i64, tpu.core_type = #tpu.core_type<tc>, window_params = [{transform_indices = @transform_0, window_bounds = array<i64: 2, 32>}, {pipeline_mode = #tpu.pipeline_mode<synchronous>, transform_indices = @transform_1, window_bounds = array<i64: 32, 64>}, {pipeline_mode = #tpu.pipeline_mode<synchronous>, transform_indices = @transform_2, window_bounds = array<i64: 1, 64>}, {pipeline_mode = #tpu.pipeline_mode<synchronous>, transform_indices = @transform_3, window_bounds = array<i64: 64, 512>}, {pipeline_mode = #tpu.pipeline_mode<synchronous>, transform_indices = @transform_4, window_bounds = array<i64: 1, 512>}, {transform_indices = @transform_5, window_bounds = array<i64: 2, 512>}]} {
    %c0 = arith.constant 0 : index
    %c0_0 = arith.constant 0 : index
    %0 = vector.load %arg1[%c0, %c0_0] : memref<2x32xf32, #tpu.memory_space<vmem>>, vector<2x32xf32>
    %c0_1 = arith.constant 0 : index
    %c0_2 = arith.constant 0 : index
    %1 = vector.load %arg2[%c0_1, %c0_2] : memref<32x64xf32, #tpu.memory_space<vmem>>, vector<32x64xf32>
    %cst = arith.constant dense<0.000000e+00> : vector<2x64xf32>
    %2 = tpu.matmul %0, %1, %cst {dimension_numbers = #tpu.dot_dimension_numbers<[1], [0], [0], [1], [0, 0, 1, 1], [], []>} : vector<2x32xf32>, vector<32x64xf32>, vector<2x64xf32> -> vector<2x64xf32>
    %c0_3 = arith.constant 0 : index
    %c0_4 = arith.constant 0 : index
    %3 = vector.load %arg3[%c0_3, %c0_4] : memref<1x64xf32, #tpu.memory_space<vmem>>, vector<1x64xf32>
    %4 = vector.broadcast %3 : vector<1x64xf32> to vector<2x64xf32>
    %5 = arith.addf %2, %4 : vector<2x64xf32>
    %cst_5 = arith.constant 0.000000e+00 : f32
    %6 = vector.broadcast %cst_5 : f32 to vector<2x64xf32>
    %7 = arith.maximumf %5, %6 : vector<2x64xf32>
    %c0_6 = arith.constant 0 : index
    %c0_7 = arith.constant 0 : index
    %8 = vector.load %arg4[%c0_6, %c0_7] : memref<64x512xf32, #tpu.memory_space<vmem>>, vector<64x256xf32>
    %cst_8 = arith.constant dense<0.000000e+00> : vector<2x256xf32>
    %9 = tpu.matmul %7, %8, %cst_8 {dimension_numbers = #tpu.dot_dimension_numbers<[1], [0], [0], [1], [0, 0, 1, 1], [], []>} : vector<2x64xf32>, vector<64x256xf32>, vector<2x256xf32> -> vector<2x256xf32>
    %c0_9 = arith.constant 0 : index
    %c0_10 = arith.constant 0 : index
    %10 = vector.load %arg5[%c0_9, %c0_10] : memref<1x512xf32, #tpu.memory_space<vmem>>, vector<1x256xf32>
    %11 = vector.broadcast %10 : vector<1x256xf32> to vector<2x256xf32>
    %12 = arith.addf %9, %11 : vector<2x256xf32>
    %13 = vector.extract_strided_slice %12 {offsets = [0, 0], sizes = [2, 128], strides = [1, 1]} : vector<2x256xf32> to vector<2x128xf32>
    %cst_11 = arith.constant dense<0xFF800000> : vector<2xf32>
    %14 = vector.multi_reduction <maximumf>, %13, %cst_11 [1] : vector<2x128xf32> to vector<2xf32>
    %15 = vector.shape_cast %14 : vector<2xf32> to vector<2x1xf32>
    %16 = vector.broadcast %15 : vector<2x1xf32> to vector<2x128xf32>
    %17 = arith.subf %13, %16 : vector<2x128xf32>
    %18 = math.exp %17 : vector<2x128xf32>
    %cst_12 = arith.constant dense<0.000000e+00> : vector<2xf32>
    %19 = vector.multi_reduction <add>, %18, %cst_12 [1] : vector<2x128xf32> to vector<2xf32>
    %20 = vector.shape_cast %19 : vector<2xf32> to vector<2x1xf32>
    %21 = tpu.reciprocal %20 {approx = true} : vector<2x1xf32> -> vector<2x1xf32>
    %22 = arith.mulf %20, %21 : vector<2x1xf32>
    %cst_13 = arith.constant 2.000000e+00 : f32
    %23 = vector.broadcast %cst_13 : f32 to vector<2x1xf32>
    %24 = arith.subf %23, %22 : vector<2x1xf32>
    %25 = arith.mulf %21, %24 : vector<2x1xf32>
    %26 = vector.broadcast %25 : vector<2x1xf32> to vector<2x128xf32>
    %27 = arith.mulf %18, %26 : vector<2x128xf32>
    %c0_14 = arith.constant 0 : index
    %c0_15 = arith.constant 0 : index
    %28 = vector.load %arg6[%c0_14, %c0_15] : memref<2x512xf32, #tpu.memory_space<vmem>>, vector<2x128xf32>
    tpu.vector_store %arg6[%c0_14, %c0_15], %27 {strides = array<i32>} : memref<2x512xf32, #tpu.memory_space<vmem>>, vector<2x128xf32>,
    %29 = vector.extract_strided_slice %12 {offsets = [0, 128], sizes = [2, 128], strides = [1, 1]} : vector<2x256xf32> to vector<2x128xf32>
    %cst_16 = arith.constant dense<0xFF800000> : vector<2xf32>
    %30 = vector.multi_reduction <maximumf>, %29, %cst_16 [1] : vector<2x128xf32> to vector<2xf32>
    %31 = vector.shape_cast %30 : vector<2xf32> to vector<2x1xf32>
    %32 = vector.broadcast %31 : vector<2x1xf32> to vector<2x128xf32>
    %33 = arith.subf %29, %32 : vector<2x128xf32>
    %34 = math.exp %33 : vector<2x128xf32>
    %cst_17 = arith.constant dense<0.000000e+00> : vector<2xf32>
    %35 = vector.multi_reduction <add>, %34, %cst_17 [1] : vector<2x128xf32> to vector<2xf32>
    %36 = vector.shape_cast %35 : vector<2xf32> to vector<2x1xf32>
    %37 = tpu.reciprocal %36 {approx = true} : vector<2x1xf32> -> vector<2x1xf32>
    %38 = arith.mulf %36, %37 : vector<2x1xf32>
    %cst_18 = arith.constant 2.000000e+00 : f32
    %39 = vector.broadcast %cst_18 : f32 to vector<2x1xf32>
    %40 = arith.subf %39, %38 : vector<2x1xf32>
    %41 = arith.mulf %37, %40 : vector<2x1xf32>
    %42 = vector.broadcast %41 : vector<2x1xf32> to vector<2x128xf32>
    %43 = arith.mulf %34, %42 : vector<2x128xf32>
    %c0_19 = arith.constant 0 : index
    %c128 = arith.constant 128 : index
    %44 = vector.load %arg6[%c0_19, %c128] : memref<2x512xf32, #tpu.memory_space<vmem>>, vector<2x128xf32>
    tpu.vector_store %arg6[%c0_19, %c128], %43 {strides = array<i32>} : memref<2x512xf32, #tpu.memory_space<vmem>>, vector<2x128xf32>,
    %c0_20 = arith.constant 0 : index
    %c256 = arith.constant 256 : index
    %45 = vector.load %arg4[%c0_20, %c256] : memref<64x512xf32, #tpu.memory_space<vmem>>, vector<64x256xf32>
    %cst_21 = arith.constant dense<0.000000e+00> : vector<2x256xf32>
    %46 = tpu.matmul %7, %45, %cst_21 {dimension_numbers = #tpu.dot_dimension_numbers<[1], [0], [0], [1], [0, 0, 1, 1], [], []>} : vector<2x64xf32>, vector<64x256xf32>, vector<2x256xf32> -> vector<2x256xf32>
    %c0_22 = arith.constant 0 : index
    %c256_23 = arith.constant 256 : index
    %47 = vector.load %arg5[%c0_22, %c256_23] : memref<1x512xf32, #tpu.memory_space<vmem>>, vector<1x256xf32>
    %48 = vector.broadcast %47 : vector<1x256xf32> to vector<2x256xf32>
    %49 = arith.addf %46, %48 : vector<2x256xf32>
    %50 = vector.extract_strided_slice %49 {offsets = [0, 0], sizes = [2, 128], strides = [1, 1]} : vector<2x256xf32> to vector<2x128xf32>
    %cst_24 = arith.constant dense<0xFF800000> : vector<2xf32>
    %51 = vector.multi_reduction <maximumf>, %50, %cst_24 [1] : vector<2x128xf32> to vector<2xf32>
    %52 = vector.shape_cast %51 : vector<2xf32> to vector<2x1xf32>
    %53 = vector.broadcast %52 : vector<2x1xf32> to vector<2x128xf32>
    %54 = arith.subf %50, %53 : vector<2x128xf32>
    %55 = math.exp %54 : vector<2x128xf32>
    %cst_25 = arith.constant dense<0.000000e+00> : vector<2xf32>
    %56 = vector.multi_reduction <add>, %55, %cst_25 [1] : vector<2x128xf32> to vector<2xf32>
    %57 = vector.shape_cast %56 : vector<2xf32> to vector<2x1xf32>
    %58 = tpu.reciprocal %57 {approx = true} : vector<2x1xf32> -> vector<2x1xf32>
    %59 = arith.mulf %57, %58 : vector<2x1xf32>
    %cst_26 = arith.constant 2.000000e+00 : f32
    %60 = vector.broadcast %cst_26 : f32 to vector<2x1xf32>
    %61 = arith.subf %60, %59 : vector<2x1xf32>
    %62 = arith.mulf %58, %61 : vector<2x1xf32>
    %63 = vector.broadcast %62 : vector<2x1xf32> to vector<2x128xf32>
    %64 = arith.mulf %55, %63 : vector<2x128xf32>
    %c0_27 = arith.constant 0 : index
    %c256_28 = arith.constant 256 : index
    %65 = vector.load %arg6[%c0_27, %c256_28] : memref<2x512xf32, #tpu.memory_space<vmem>>, vector<2x128xf32>
    tpu.vector_store %arg6[%c0_27, %c256_28], %64 {strides = array<i32>} : memref<2x512xf32, #tpu.memory_space<vmem>>, vector<2x128xf32>,
    %66 = vector.extract_strided_slice %49 {offsets = [0, 128], sizes = [2, 128], strides = [1, 1]} : vector<2x256xf32> to vector<2x128xf32>
    %cst_29 = arith.constant dense<0xFF800000> : vector<2xf32>
    %67 = vector.multi_reduction <maximumf>, %66, %cst_29 [1] : vector<2x128xf32> to vector<2xf32>
    %68 = vector.shape_cast %67 : vector<2xf32> to vector<2x1xf32>
    %69 = vector.broadcast %68 : vector<2x1xf32> to vector<2x128xf32>
    %70 = arith.subf %66, %69 : vector<2x128xf32>
    %71 = math.exp %70 : vector<2x128xf32>
    %cst_30 = arith.constant dense<0.000000e+00> : vector<2xf32>
    %72 = vector.multi_reduction <add>, %71, %cst_30 [1] : vector<2x128xf32> to vector<2xf32>
    %73 = vector.shape_cast %72 : vector<2xf32> to vector<2x1xf32>
    %74 = tpu.reciprocal %73 {approx = true} : vector<2x1xf32> -> vector<2x1xf32>
    %75 = arith.mulf %73, %74 : vector<2x1xf32>
    %cst_31 = arith.constant 2.000000e+00 : f32
    %76 = vector.broadcast %cst_31 : f32 to vector<2x1xf32>
    %77 = arith.subf %76, %75 : vector<2x1xf32>
    %78 = arith.mulf %74, %77 : vector<2x1xf32>
    %79 = vector.broadcast %78 : vector<2x1xf32> to vector<2x128xf32>
    %80 = arith.mulf %71, %79 : vector<2x128xf32>
    %c0_32 = arith.constant 0 : index
    %c384 = arith.constant 384 : index
    %81 = vector.load %arg6[%c0_32, %c384] : memref<2x512xf32, #tpu.memory_space<vmem>>, vector<2x128xf32>
    tpu.vector_store %arg6[%c0_32, %c384], %80 {strides = array<i32>} : memref<2x512xf32, #tpu.memory_space<vmem>>, vector<2x128xf32>,
    return
  }
  func.func @transform_0(%arg0: i32) -> (i32, i32) {
    %c0_i32 = arith.constant 0 : i32
    %c0_i32_0 = arith.constant 0 : i32
    return %arg0, %c0_i32 : i32, i32
  }
  func.func @transform_1(%arg0: i32) -> (i32, i32) {
    %c0_i32 = arith.constant 0 : i32
    %c0_i32_0 = arith.constant 0 : i32
    %c0_i32_1 = arith.constant 0 : i32
    return %c0_i32, %c0_i32_0 : i32, i32
  }
  func.func @transform_2(%arg0: i32) -> (i32, i32) {
    %c0_i32 = arith.constant 0 : i32
    %c0_i32_0 = arith.constant 0 : i32
    %c0_i32_1 = arith.constant 0 : i32
    return %c0_i32, %c0_i32_0 : i32, i32
  }
  func.func @transform_3(%arg0: i32) -> (i32, i32) {
    %c0_i32 = arith.constant 0 : i32
    %c0_i32_0 = arith.constant 0 : i32
    %c0_i32_1 = arith.constant 0 : i32
    return %c0_i32, %c0_i32_0 : i32, i32
  }
  func.func @transform_4(%arg0: i32) -> (i32, i32) {
    %c0_i32 = arith.constant 0 : i32
    %c0_i32_0 = arith.constant 0 : i32
    %c0_i32_1 = arith.constant 0 : i32
    return %c0_i32, %c0_i32_0 : i32, i32
  }
  func.func @transform_5(%arg0: i32) -> (i32, i32) {
    %c0_i32 = arith.constant 0 : i32
    %c0_i32_0 = arith.constant 0 : i32
    return %arg0, %c0_i32 : i32, i32
  }
}

</mosaic_0001>

<bundles_post_ra>
// kernel: tpu_custom_call.1
= control target key start
LH: loop header
LB: loop body
LE: loop exit
PB: predicated region body
PF: predicated region fallthrough
CT: control target
= control target key end

     0   :  { %10 = vsyncpa [#allocation3], 0  ;;  %s546_s0 = inlined_call_operand.hbm [shape: f32[2,32], index: 0, kind: input, shape index: {}]   ;;  %s547_s1 = inlined_call_operand.hbm [shape: f32[32,64], index: 1, kind: input, shape index: {}]   ;;  %s548_s2 = inlined_call_operand.vmem [shape: f32[1,64], index: 2, kind: input, shape index: {}]   ;;  %s549_s3 = inlined_call_operand.hbm [shape: f32[64,512], index: 3, kind: input, shape index: {}]   ;;  %s550_s4 = inlined_call_operand.hbm [shape: f32[1,512], index: 4, kind: input, shape index: {}]   ;;  %s551_s5 = inlined_call_operand.hbm [shape: f32[2,512], index: 5, kind: output, shape index: {}]  }
   0x1   :  { %11 = vsyncpa [#allocation6], 0 }
   0x2   :  { %12 = vsyncpa [#allocation9], 0  ;;  %s29_s20 = sshll.u32 %s547_s1, 4  ;;  %s30_s20 = int_to_ptr.hbm [resolvable:$true] %s29_s20 }
   0x3   :  { %13 = vsyncpa [#allocation4], 0  ;;  %s481_s21 = smov [#allocation5]   ;;  %s19_s25 = sshll.u32 %s546_s0, 4  ;;  %s20_s25 = int_to_ptr.hbm [resolvable:$true] %s19_s25 }
   0x4   :  { %s31_s22 = sshll.u32 %s481_s21, 4  ;;  %s482_s26 = smov 128   ;;  %s32_s22 = int_to_ptr.vmem [resolvable:$true] %s31_s22 }
   0x5   :  { %s483_s27 = smov 8   ;;  %s484_s28 = smov [#allocation2]  }
   0x6   :  { %37 = dma.hbm_to_vmem [thread:$0]  %s30_s20, 512, %s32_s22, [#allocation6], %s482_s26, %s482_s26, %s483_s27  }
   0x7   :  { %s21_s29 = sshll.u32 %s484_s28, 4  ;;  %s44_s7 = sshll.u32 %s549_s3, 4  ;;  %s22_s29 = int_to_ptr.vmem [resolvable:$true] %s21_s29  ;;  %s45_s7 = int_to_ptr.hbm [resolvable:$true] %s44_s7 }
   0x8   :  { %24 = dma.hbm_to_vmem [thread:$0]  %s20_s25, 32, %s22_s29, [#allocation3]  }
   0x9   :  { %s485_s1 = smov [#allocation7]   ;;  %s58_s0 = sshll.u32 %s550_s4, 4  ;;  %s59_s0 = int_to_ptr.hbm [resolvable:$true] %s58_s0 }
   0xa   :  { %s46_s8 = sshll.u32 %s485_s1, 4  ;;  %s486_s11 = smov 512   ;;  %s47_s8 = int_to_ptr.vmem [resolvable:$true] %s46_s8 }
   0xb   :  { %s487_s12 = smov 32   ;;  %s488_s13 = smov [#allocation8]  }
   0xc   :  { %52 = dma.hbm_to_vmem [thread:$0]  %s45_s7, 4096, %s47_s8, [#allocation6], %s486_s11, %s486_s11, %s487_s12  }
   0xd   :  { %s60_s14 = sshll.u32 %s488_s13, 4  ;;  %s61_s14 = int_to_ptr.vmem [resolvable:$true] %s60_s14 }
   0xe   :  { %63 = dma.hbm_to_vmem [thread:$0]  %s59_s0, 64, %s61_s14, [#allocation9]  }
   0xf   :  { %473 = dma.done.wait [#allocation3], 32  }
  0x10   :  { %474 = vsyncadd [#allocation3], 4294967264 }
  0x11   :  { %475 = dma.done.wait [#allocation6], 4608  }
  0x12   :  { %476 = vsyncadd [#allocation6], 4294962688 }
  0x13   :  { %477 = dma.done.wait [#allocation9], 64  }
  0x14   :  { %478 = vsyncadd [#allocation9], 4294967232  ;;  %v84_v0 = vld [vmem:[#allocation5 + $0x18] sm:$0xff]  ;;  %v83_v1 = vld [vmem:[#allocation5 + $0x10] sm:$0xff]  ;;  %vm89_vm0 = vcmask 261120   ;;  %vm136_vm1 = vcmask 523264  }
  0x15   :  { %105 = vmatpush.msra.mxu0 %v84_v0  ;;  %v128_v2 = vld [vmem:[#allocation7 + $0xe0] sm:$0xff]  ;;  %v82_v3 = vld [vmem:[#allocation5 + $0x8] sm:$0xff]  ;;  %v225_v5 = vld [vmem:[#allocation7 + $0xf0] sm:$0xff]  ;;  %vm180_vm2 = vcmask 1041408   ;;  %s310_s18 = sshll.u32 %s551_s5, 4  ;;  %s311_s18 = int_to_ptr.hbm [resolvable:$true] %s310_s18 }
  0x16   :  { %148 = vmatpush.msra.mxu1 %v128_v2  ;;  %v129_v4 = vld [vmem:[#allocation7 + $0xe8] sm:$0xff]  ;;  %v126_v6 = vld [vmem:[#allocation7 + $0xc0] sm:$0xff]  ;;  %v223_v8 = vld [vmem:[#allocation7 + $0xd0] sm:$0xff]  ;;  %241 = vmatpush.msra.mxu3 %v225_v5 }
  0x17   :  { %106 = vmatpush.msra.mxu0 %v83_v1  ;;  %168 = vmatpush.msra.mxu2 %v129_v4  ;;  %v127_v7 = vld [vmem:[#allocation7 + $0xc8] sm:$0xff]  ;;  %v81_v9 = vld [vmem:[#allocation5] sm:$0xff]  ;;  %v80_v12 = vld [vmem:[#allocation2] sm:$0x3] }
  0x18   :  { %149 = vmatpush.msra.mxu1 %v126_v6  ;;  %v124_v10 = vld [vmem:[#allocation7 + $0xa0] sm:$0xff]  ;;  %v125_v11 = vld [vmem:[#allocation7 + $0xa8] sm:$0xff]  ;;  %v221_v13 = vld [vmem:[#allocation7 + $0xb0] sm:$0xff]  ;;  %242 = vmatpush.msra.mxu3 %v223_v8 }
  0x19   :  { %107 = vmatpush.msra.mxu0 %v82_v3  ;;  %169 = vmatpush.msra.mxu2 %v127_v7  ;;  %v226_v14 = vld [vmem:[#allocation7 + $0xf8] sm:$0xff]  ;;  %v122_v15 = vld [vmem:[#allocation7 + $0x80] sm:$0xff]  ;;  %v123_v16 = vld [vmem:[#allocation7 + $0x88] sm:$0xff] }
  0x1a   :  { %150 = vmatpush.msra.mxu1 %v124_v10  ;;  %v219_v17 = vld [vmem:[#allocation7 + $0x90] sm:$0xff]  ;;  %v224_v18 = vld [vmem:[#allocation7 + $0xd8] sm:$0xff]  ;;  %243 = vmatpush.msra.mxu3 %v221_v13  ;;  %v120_v19 = vld [vmem:[#allocation7 + $0x60] sm:$0xff] }
  0x1b   :  { %108 = vmatpush.msra.mxu0 %v81_v9  ;;  %170 = vmatpush.msra.mxu2 %v125_v11  ;;  %v121_v20 = vld [vmem:[#allocation7 + $0x68] sm:$0xff]  ;;  %v217_v21 = vld [vmem:[#allocation7 + $0x70] sm:$0xff]  ;;  %v222_v22 = vld [vmem:[#allocation7 + $0xb8] sm:$0xff] }
  0x1c   :  { %322 = vmatmul.msk.f32.vlgmr.msra.gmra.mxu0 %vm89_vm0, %v80_v12  ;;  %151 = vmatpush.msra.mxu1 %v122_v15  ;;  %v220_v23 = vld [vmem:[#allocation7 + $0x98] sm:$0xff]  ;;  %v118_v25 = vld [vmem:[#allocation7 + $0x40] sm:$0xff]  ;;  %v119_v26 = vld [vmem:[#allocation7 + $0x48] sm:$0xff] }
  0x1d   :  { %261 = vmatpush.msrb.mxu0 %v226_v14  ;;  %171 = vmatpush.msra.mxu2 %v123_v16  ;;  %v218_v24 = vld [vmem:[#allocation7 + $0x78] sm:$0xff]  ;;  %v215_v27 = vld [vmem:[#allocation7 + $0x50] sm:$0xff]  ;;  %v116_v29 = vld [vmem:[#allocation7 + $0x20] sm:$0xff] }
  0x1e   :  { %244 = vmatpush.msra.mxu3 %v219_v17  ;;  %152 = vmatpush.msra.mxu1 %v120_v19  ;;  %v216_v28 = vld [vmem:[#allocation7 + $0x58] sm:$0xff]  ;;  %v117_v30 = vld [vmem:[#allocation7 + $0x28] sm:$0xff]  ;;  %v213_v31 = vld [vmem:[#allocation7 + $0x30] sm:$0xff] }
  0x1f   :  { %262 = vmatpush.msrb.mxu0 %v224_v18  ;;  %172 = vmatpush.msra.mxu2 %v121_v20  ;;  %v214_v32 = vld [vmem:[#allocation7 + $0x38] sm:$0xff]  ;;  %v114_v33 = vld [vmem:[#allocation7] sm:$0xff]  ;;  %v115_v34 = vld [vmem:[#allocation7 + $0x8] sm:$0xff] }
  0x20   :  { %245 = vmatpush.msra.mxu3 %v217_v21  ;;  %153 = vmatpush.msra.mxu1 %v118_v25  ;;  %v211_v35 = vld [vmem:[#allocation7 + $0x10] sm:$0xff]  ;;  %v212_v36 = vld [vmem:[#allocation7 + $0x18] sm:$0xff]  ;;  %v130_v41 = vld [vmem:[#allocation8] sm:$0x3] }
  0x21   :  { %263 = vmatpush.msrb.mxu0 %v222_v22  ;;  %173 = vmatpush.msra.mxu2 %v119_v26  ;;  %v336_v37 = vld [vmem:[%s548_s2] ss:$0 sm:$0xff]  ;;  %v132_v42 = vperm.slane %v130_v41, 0  ;;  %v227_v45 = vld [vmem:[#allocation8 + $0x2] sm:$0x3]  ;;  %v133_v47 = vperm.slane %v130_v41, 1 }
  0x22   :  { %246 = vmatpush.msra.mxu3 %v215_v27  ;;  %154 = vmatpush.msra.mxu1 %v116_v29  ;;  %v229_v48 = vperm.slane %v227_v45, 0  ;;  %v230_v53 = vperm.slane %v227_v45, 1  ;;  %s489_s2 = smov [#allocation10]  }
  0x23   :  { %264 = vmatpush.msrb.mxu0 %v220_v23  ;;  %174 = vmatpush.msra.mxu2 %v117_v30  ;;  %s308_s15 = sshll.u32 %s489_s2, 4  ;;  %s309_s15 = int_to_ptr.vmem [resolvable:$true] %s308_s15 }
  0x24   :  { %247 = vmatpush.msra.mxu3 %v213_v31  ;;  %155 = vmatpush.msra.mxu1 %v114_v33 }
  0x25   :  { %265 = vmatpush.msrb.mxu0 %v218_v24  ;;  %175 = vmatpush.msra.mxu2 %v115_v34 }
  0x26   :  { %248 = vmatpush.msra.mxu3 %v211_v35 }
  0x27   :  { %266 = vmatpush.msrb.mxu0 %v216_v28 }
  0x29   :  { %267 = vmatpush.msrb.mxu0 %v214_v32 }
  0x2b   :  { %268 = vmatpush.msrb.mxu0 %v212_v36 }
  0x99   :  { %v110_v38 = vpop.f32.mrf.mxu0 }
  0x9a   :  { %v111_v39 = vadd.f32 %v336_v37, %v110_v38 }
  0x9c   :  { %v113_v40 = vmax.f32 %v111_v39, 0.0 }
  0x9e   :  { %323 = vmatmul.msk.f32.vlgmr.msra.gmra.mxu1 %vm136_vm1, %v113_v40  ;;  %324 = vmatmul.msk.f32.vlgmr.msra.gmra.mxu2 %vm136_vm1, %v113_v40 }
  0x9f   :  { %325 = vmatmul.msk.f32.vlgmr.msra.gmra.mxu3 %vm136_vm1, %v113_v40  ;;  %326 = vmatmul.msk.f32.vlgmr.msrb.gmra.mxu0 %vm136_vm1, %v113_v40 }
 0x11b   :  { %v157_v43 = vpop.f32.mrf.mxu1 }
 0x11c   :  { %v158_v44 = vadd.f32 %v157_v43, %v132_v42  ;;  %v270_v55 = vpop.f32.mrf.mxu0 }
 0x11d   :  { %v271_v57 = vadd.f32 %v270_v55, %v230_v53 }
 0x11e   :  { %v181_v46 = vsel %vm180_vm2, %v158_v44, -inf }
 0x11f   :  { %182 = vmax.xlane.f32.xlu0 %v181_v46  ;;  %v288_v58 = vsel %vm180_vm2, %v271_v57, -inf }
 0x121   :  { %v177_v49 = vpop.f32.mrf.mxu2 }
 0x122   :  { %v178_v50 = vadd.f32 %v177_v49, %v133_v47  ;;  %v250_v51 = vpop.f32.mrf.mxu3 }
 0x123   :  { %v251_v52 = vadd.f32 %v250_v51, %v229_v48 }
 0x124   :  { %v196_v56 = vsel %vm180_vm2, %v178_v50, -inf }
 0x125   :  { %v273_v54 = vsel %vm180_vm2, %v251_v52, -inf }
 0x126   :  { %274 = vmax.xlane.f32.xlu1 %v273_v54 }
 0x127   :  { %197 = vmax.xlane.f32.xlu0 %v196_v56 }
 0x12e   :  { %289 = vmax.xlane.f32.xlu1 %v288_v58 }
 0x192   :  { %v183_v59 = vpop.xlane.xlu0 %182 }
 0x193   :  { %v184_v60 = vsub.f32 %v158_v44, %v183_v59 }
 0x195   :  { %v185_v61 = vmul.f32 1.442695, %v184_v60 }
 0x197   :  { %337 = vpow2.f32 %v185_v61 }
 0x199   :  { %v275_v62 = vpop.xlane.xlu1 %274 }
 0x19a   :  { %v276_v63 = vsub.f32 %v251_v52, %v275_v62  ;;  %v198_v0 = vpop.xlane.xlu0 %197 }
 0x19b   :  { %v199_v1 = vsub.f32 %v178_v50, %v198_v0 }
 0x19c   :  { %v277_v2 = vmul.f32 1.442695, %v276_v63 }
 0x19d   :  { %v338_v3 = vpop.eup %337  ;;  %v200_v4 = vmul.f32 1.442695, %v199_v1 }
 0x19e   :  { %339 = vpow2.f32 %v277_v2  ;;  %v187_v5 = vsel %vm180_vm2, %v338_v3, 0.0 }
 0x19f   :  { %341 = vpow2.f32 %v200_v4  ;;  %188 = vadd.xlane.f32.xlu2 %v187_v5 }
 0x1a1   :  { %v290_v6 = vpop.xlane.xlu1 %289 }
 0x1a2   :  { %v291_v7 = vsub.f32 %v271_v57, %v290_v6 }
 0x1a4   :  { %v340_v8 = vpop.eup %339  ;;  %v292_v9 = vmul.f32 1.442695, %v291_v7 }
 0x1a5   :  { %v342_v10 = vpop.eup %341  ;;  %v279_v11 = vsel %vm180_vm2, %v340_v8, 0.0 }
 0x1a6   :  { %343 = vpow2.f32 %v292_v9  ;;  %280 = vadd.xlane.f32.xlu0 %v279_v11  ;;  %v202_v12 = vsel %vm180_vm2, %v342_v10, 0.0 }
 0x1a7   :  { %203 = vadd.xlane.f32.xlu2 %v202_v12 }
 0x1ac   :  { %v344_v13 = vpop.eup %343 }
 0x1ad   :  { %v294_v14 = vsel %vm180_vm2, %v344_v13, 0.0 }
 0x1ae   :  { %295 = vadd.xlane.f32.xlu1 %v294_v14 }
 0x212   :  { %v189_v15 = vpop.xlane.xlu2 %188 }
 0x213   :  { %345 = vrcp.f32 %v189_v15 }
 0x219   :  { %v346_v16 = vpop.eup %345  ;;  %v281_v17 = vpop.xlane.xlu0 %280 }
 0x21a   :  { %v191_v18 = vmul.f32 %v346_v16, %v189_v15  ;;  %347 = vrcp.f32 %v281_v17  ;;  %v204_v19 = vpop.xlane.xlu2 %203 }
 0x21b   :  { %349 = vrcp.f32 %v204_v19 }
 0x21c   :  { %v192_v20 = vsub.f32 2.0, %v191_v18 }
 0x21e   :  { %v193_v21 = vmul.f32 %v346_v16, %v192_v20 }
 0x220   :  { %v348_v22 = vpop.eup %347  ;;  %v194_v23 = vmul.f32 %v338_v3, %v193_v21 }
 0x221   :  { %v350_v24 = vpop.eup %349  ;;  %v283_v25 = vmul.f32 %v348_v22, %v281_v17  ;;  %v296_v26 = vpop.xlane.xlu1 %295 }
 0x222   :  { %195 = vst [vmem:[#allocation10] sm:$0x3] %v194_v23  ;;  %v206_v27 = vmul.f32 %v350_v24, %v204_v19  ;;  %351 = vrcp.f32 %v296_v26 }
 0x223   :  { %v284_v28 = vsub.f32 2.0, %v283_v25 }
 0x224   :  { %v207_v29 = vsub.f32 2.0, %v206_v27 }
 0x225   :  { %v285_v30 = vmul.f32 %v348_v22, %v284_v28 }
 0x226   :  { %v208_v31 = vmul.f32 %v350_v24, %v207_v29 }
 0x227   :  { %v286_v32 = vmul.f32 %v340_v8, %v285_v30 }
 0x228   :  { %v352_v33 = vpop.eup %351  ;;  %v209_v34 = vmul.f32 %v342_v10, %v208_v31 }
 0x229   :  { %287 = vst [vmem:[#allocation10 + $0x4] sm:$0x3] %v286_v32  ;;  %v298_v35 = vmul.f32 %v352_v33, %v296_v26 }
 0x22a   :  { %210 = vst [vmem:[#allocation10 + $0x2] sm:$0x3] %v209_v34 }
 0x22b   :  { %v299_v36 = vsub.f32 2.0, %v298_v35 }
 0x22d   :  { %v300_v37 = vmul.f32 %v352_v33, %v299_v36 }
 0x22f   :  { %v301_v38 = vmul.f32 %v344_v13, %v300_v37 }
 0x231   :  { %302 = vst [vmem:[#allocation10 + $0x6] sm:$0x3] %v301_v38 }
 0x232   :  { %313 = dma.vmem_to_hbm [thread:$0]  %s309_s15, 128, %s311_s18, [#allocation4]  }
 0x233   :  { %479 = dma.done.wait [#allocation4], 128  }
 0x234   :  { %480 = vsyncadd [#allocation4], 4294967168 }
 0x235   :  { %318 = vsyncpa [#allocation3], 1 }
 0x236   :  { %319 = vsyncpa [#allocation6], 1 }
 0x237   :  { %320 = vsyncpa [#allocation9], 1 }
 0x238   :  { %321 = vsyncpa [#allocation4], 1 }

</bundles_post_ra>
